<compile_context>
chip_gen: v5e
topology: v5e:2x2
jax: 0.10.0
libtpu: 0.0.40
codegen_flags: <defaults>
</compile_context>

<pallas_src>
import math

import jax
import jax.numpy as jnp
from jax.experimental import pallas as pl
from jax.experimental.pallas import tpu as pltpu

# Small config consistent with the module (layer_id = 0).
BATCH = 2
C_IN = 32        # config.num_neuron
C_OUT = 32       # config.conv_dim[0]
KSIZE = 3        # config.conv_kernel[0]
STRIDE = 2       # config.conv_stride[0]
L_IN = 33
L_OUT = (L_IN - KSIZE) // STRIDE + 1   # = 16 (valid conv)
GN_EPS = 1e-5    # nn.GroupNorm default eps
INV_SQRT2 = 1.0 / math.sqrt(2.0)


def gn_conv_kernel(x_ref, w_ref, g_ref, beta_ref, o_ref):
    """x_ref: (B*L_OUT, K*C_IN) im2col slab; w_ref: (K*C_IN, C_OUT);
    g_ref/beta_ref: (1, C_OUT); o_ref: (B, C_OUT, L_OUT)."""
    # One MXU matmul does the whole convolution.
    y = jnp.dot(x_ref[...], w_ref[...],
                preferred_element_type=jnp.float32,
                precision=jax.lax.Precision.HIGHEST)          # (B*L_OUT, C_OUT)
    # Conv1d bias intentionally omitted: with groups == channels it cancels
    # exactly inside GroupNorm (mean shift) and variance is shift-invariant.

    # GroupNorm with groups == channels: per-(batch, channel) stats over time,
    # computed once on a (B, L_OUT, C_OUT) view (single sublane reduction).
    y = y.reshape(BATCH, L_OUT, C_OUT)
    mu = jnp.mean(y, axis=1, keepdims=True)                   # (B, 1, C_OUT)
    var = jnp.mean(jnp.square(y - mu), axis=1, keepdims=True)
    y = (y - mu) * jax.lax.rsqrt(var + GN_EPS) * g_ref[...] + beta_ref[...]

    # Exact GELU (nn.GELU() default, approximate='none').
    y = 0.5 * y * (1.0 + jax.lax.erf(y * INV_SQRT2))

    # Fold the (B, L_OUT, C) -> (B, C, L_OUT) layout change into the kernel
    # (XLU transpose, otherwise-idle slot) so the wrapper does no post-transpose.
    o_ref[...] = jnp.transpose(y, (0, 2, 1))


def group_norm_conv_forward(x, w, b, gamma, beta):
    """x: (B, C_in, L); w: (C_out, C_in, K); b/gamma/beta: (C_out,).
    Returns (B, C_out, L_out) matching the PyTorch module."""
    B, C_in, L = x.shape
    C_out, _, K = w.shape
    assert (B, C_in, L, C_out, K) == (BATCH, C_IN, L_IN, C_OUT, KSIZE)
    del b  # conv bias cancels exactly under per-channel GroupNorm (see kernel)

    # im2col in the wrapper: (B*L_OUT, K*C_IN) patch slab, channels on lanes.
    x_t = jnp.transpose(x, (0, 2, 1))                          # (B, L_IN, C_IN)
    span = (L_OUT - 1) * STRIDE + 1
    taps = [x_t[:, k:k + span:STRIDE, :] for k in range(K)]    # K x (B, L_OUT, C_IN)
    patches = jnp.stack(taps, axis=2).reshape(B * L_OUT, K * C_in)
    w_mat = jnp.transpose(w, (2, 1, 0)).reshape(K * C_in, C_out)  # rows: k*C_IN + c
    g2 = gamma.reshape(1, C_out)
    beta2 = beta.reshape(1, C_out)

    out = pl.pallas_call(
        gn_conv_kernel,
        out_shape=jax.ShapeDtypeStruct((B, C_out, L_OUT), jnp.float32),
        grid_spec=pltpu.PrefetchScalarGridSpec(
            num_scalar_prefetch=0,
            grid=(1,),
            in_specs=[
                pl.BlockSpec((B * L_OUT, K * C_in), lambda i: (0, 0)),
                pl.BlockSpec((K * C_in, C_out), lambda i: (0, 0)),
                pl.BlockSpec((1, C_out), lambda i: (0, 0)),
                pl.BlockSpec((1, C_out), lambda i: (0, 0)),
            ],
            out_specs=pl.BlockSpec((B, C_out, L_OUT), lambda i: (0, 0, 0)),
        ),
        compiler_params=pltpu.CompilerParams(
            dimension_semantics=("arbitrary",)),
    )(patches, w_mat, g2, beta2)

    return out  # already (B, C_out, L_out); no wrapper-side transpose needed


def group_norm_conv_ref(x, w, b, gamma, beta):
    """Pure-JAX reference mirroring the PyTorch module (bias included)."""
    y = jax.lax.conv_general_dilated(
        x, w, window_strides=(STRIDE,), padding='VALID',
        dimension_numbers=('NCH', 'OIH', 'NCH'),
        precision=jax.lax.Precision.HIGHEST)
    y = y + b[None, :, None]
    mu = jnp.mean(y, axis=2, keepdims=True)
    var = jnp.mean(jnp.square(y - mu), axis=2, keepdims=True)
    y = (y - mu) / jnp.sqrt(var + GN_EPS) * gamma[None, :, None] + beta[None, :, None]
    return 0.5 * y * (1.0 + jax.lax.erf(y * INV_SQRT2))


if __name__ == "__main__":
    key = jax.random.PRNGKey(0)
    kx, kw, kb, kg, kbe = jax.random.split(key, 5)
    x = jax.random.normal(kx, (BATCH, C_IN, L_IN), jnp.float32)
    w = 0.1 * jax.random.normal(kw, (C_OUT, C_IN, KSIZE), jnp.float32)
    b = 0.1 * jax.random.normal(kb, (C_OUT,), jnp.float32)
    gamma = 1.0 + 0.1 * jax.random.normal(kg, (C_OUT,), jnp.float32)
    beta = 0.1 * jax.random.normal(kbe, (C_OUT,), jnp.float32)

    out = group_norm_conv_forward(x, w, b, gamma, beta)
    out = jax.block_until_ready(out)
    assert out.shape == (BATCH, C_OUT, L_OUT), out.shape

    ref = group_norm_conv_ref(x, w, b, gamma, beta)
    err = float(jnp.max(jnp.abs(out - ref)))
    assert jnp.allclose(out, ref, atol=1e-4, rtol=1e-4), f"max |err| = {err}"
    print("KERNEL_OK")
</pallas_src>

<mosaic_0001>
module attributes {stable_mosaic.version = 11 : i64} {
  func.func @gn_conv_kernel(%arg0: i32, %arg1: memref<32x96xf32, #tpu.memory_space<vmem>>, %arg2: memref<96x32xf32, #tpu.memory_space<vmem>>, %arg3: memref<1x32xf32, #tpu.memory_space<vmem>>, %arg4: memref<1x32xf32, #tpu.memory_space<vmem>>, %arg5: memref<2x32x16xf32, #tpu.memory_space<vmem>>) attributes {dimension_semantics = [#tpu.dimension_semantics<arbitrary>], iteration_bounds = array<i64: 1>, scalar_prefetch = 0 : i64, scratch_operands = 0 : i64, tpu.core_type = #tpu.core_type<tc>, window_params = [{pipeline_mode = #tpu.pipeline_mode<synchronous>, transform_indices = @transform_0, window_bounds = array<i64: 32, 96>}, {pipeline_mode = #tpu.pipeline_mode<synchronous>, transform_indices = @transform_1, window_bounds = array<i64: 96, 32>}, {pipeline_mode = #tpu.pipeline_mode<synchronous>, transform_indices = @transform_2, window_bounds = array<i64: 1, 32>}, {pipeline_mode = #tpu.pipeline_mode<synchronous>, transform_indices = @transform_3, window_bounds = array<i64: 1, 32>}, {pipeline_mode = #tpu.pipeline_mode<synchronous>, transform_indices = @transform_4, window_bounds = array<i64: 2, 32, 16>}]} {
    %c0 = arith.constant 0 : index
    %c0_0 = arith.constant 0 : index
    %0 = vector.load %arg1[%c0, %c0_0] : memref<32x96xf32, #tpu.memory_space<vmem>>, vector<32x96xf32>
    %c0_1 = arith.constant 0 : index
    %c0_2 = arith.constant 0 : index
    %1 = vector.load %arg2[%c0_1, %c0_2] : memref<96x32xf32, #tpu.memory_space<vmem>>, vector<96x32xf32>
    %cst = arith.constant dense<0.000000e+00> : vector<32x32xf32>
    %2 = tpu.matmul %0, %1, %cst {dimension_numbers = #tpu.dot_dimension_numbers<[1], [0], [0], [1], [0, 0, 1, 1], [], []>, precision = #tpu.contract_precision<fp32>} : vector<32x96xf32>, vector<96x32xf32>, vector<32x32xf32> -> vector<32x32xf32>
    %3 = vector.shape_cast %2 : vector<32x32xf32> to vector<2x16x32xf32>
    %cst_3 = arith.constant dense<0.000000e+00> : vector<2x32xf32>
    %4 = vector.multi_reduction <add>, %3, %cst_3 [1] : vector<2x16x32xf32> to vector<2x32xf32>
    %5 = vector.shape_cast %4 : vector<2x32xf32> to vector<2x1x32xf32>
    %cst_4 = arith.constant 1.600000e+01 : f32
    %6 = vector.broadcast %cst_4 : f32 to vector<2x1x32xf32>
    %7 = arith.divf %5, %6 : vector<2x1x32xf32>
    %8 = vector.broadcast %7 : vector<2x1x32xf32> to vector<2x16x32xf32>
    %9 = arith.subf %3, %8 : vector<2x16x32xf32>
    %10 = arith.mulf %9, %9 : vector<2x16x32xf32>
    %cst_5 = arith.constant dense<0.000000e+00> : vector<2x32xf32>
    %11 = vector.multi_reduction <add>, %10, %cst_5 [1] : vector<2x16x32xf32> to vector<2x32xf32>
    %12 = vector.shape_cast %11 : vector<2x32xf32> to vector<2x1x32xf32>
    %cst_6 = arith.constant 1.600000e+01 : f32
    %13 = vector.broadcast %cst_6 : f32 to vector<2x1x32xf32>
    %14 = arith.divf %12, %13 : vector<2x1x32xf32>
    %15 = vector.broadcast %7 : vector<2x1x32xf32> to vector<2x16x32xf32>
    %16 = arith.subf %3, %15 : vector<2x16x32xf32>
    %cst_7 = arith.constant 9.99999974E-6 : f32
    %17 = vector.broadcast %cst_7 : f32 to vector<2x1x32xf32>
    %18 = arith.addf %14, %17 : vector<2x1x32xf32>
    %19 = math.rsqrt %18 : vector<2x1x32xf32>
    %20 = vector.broadcast %19 : vector<2x1x32xf32> to vector<2x16x32xf32>
    %21 = arith.mulf %16, %20 : vector<2x16x32xf32>
    %c0_8 = arith.constant 0 : index
    %c0_9 = arith.constant 0 : index
    %22 = vector.load %arg3[%c0_8, %c0_9] : memref<1x32xf32, #tpu.memory_space<vmem>>, vector<1x32xf32>
    %23 = vector.shape_cast %22 : vector<1x32xf32> to vector<1x1x32xf32>
    %24 = vector.broadcast %23 : vector<1x1x32xf32> to vector<2x16x32xf32>
    %25 = arith.mulf %21, %24 : vector<2x16x32xf32>
    %c0_10 = arith.constant 0 : index
    %c0_11 = arith.constant 0 : index
    %26 = vector.load %arg4[%c0_10, %c0_11] : memref<1x32xf32, #tpu.memory_space<vmem>>, vector<1x32xf32>
    %27 = vector.shape_cast %26 : vector<1x32xf32> to vector<1x1x32xf32>
    %28 = vector.broadcast %27 : vector<1x1x32xf32> to vector<2x16x32xf32>
    %29 = arith.addf %25, %28 : vector<2x16x32xf32>
    %cst_12 = arith.constant 5.000000e-01 : f32
    %30 = vector.broadcast %cst_12 : f32 to vector<2x16x32xf32>
    %31 = arith.mulf %30, %29 : vector<2x16x32xf32>
    %cst_13 = arith.constant 0.707106769 : f32
    %32 = vector.broadcast %cst_13 : f32 to vector<2x16x32xf32>
    %33 = arith.mulf %29, %32 : vector<2x16x32xf32>
    %34 = math.erf %33 : vector<2x16x32xf32>
    %cst_14 = arith.constant 1.000000e+00 : f32
    %35 = vector.broadcast %cst_14 : f32 to vector<2x16x32xf32>
    %36 = arith.addf %35, %34 : vector<2x16x32xf32>
    %37 = arith.mulf %31, %36 : vector<2x16x32xf32>
    %38 = tpu.transpose %37, [0, 2, 1] : vector<2x16x32xf32> -> vector<2x32x16xf32>
    %c0_15 = arith.constant 0 : index
    %c0_16 = arith.constant 0 : index
    %c0_17 = arith.constant 0 : index
    %39 = vector.load %arg5[%c0_15, %c0_16, %c0_17] : memref<2x32x16xf32, #tpu.memory_space<vmem>>, vector<2x32x16xf32>
    tpu.vector_store %arg5[%c0_15, %c0_16, %c0_17], %38 {strides = array<i32>} : memref<2x32x16xf32, #tpu.memory_space<vmem>>, vector<2x32x16xf32>,
    return
  }
  func.func @transform_0(%arg0: i32) -> (i32, i32) {
    %c0_i32 = arith.constant 0 : i32
    %c0_i32_0 = arith.constant 0 : i32
    %c0_i32_1 = arith.constant 0 : i32
    return %c0_i32, %c0_i32_0 : i32, i32
  }
  func.func @transform_1(%arg0: i32) -> (i32, i32) {
    %c0_i32 = arith.constant 0 : i32
    %c0_i32_0 = arith.constant 0 : i32
    %c0_i32_1 = arith.constant 0 : i32
    return %c0_i32, %c0_i32_0 : i32, i32
  }
  func.func @transform_2(%arg0: i32) -> (i32, i32) {
    %c0_i32 = arith.constant 0 : i32
    %c0_i32_0 = arith.constant 0 : i32
    %c0_i32_1 = arith.constant 0 : i32
    return %c0_i32, %c0_i32_0 : i32, i32
  }
  func.func @transform_3(%arg0: i32) -> (i32, i32) {
    %c0_i32 = arith.constant 0 : i32
    %c0_i32_0 = arith.constant 0 : i32
    %c0_i32_1 = arith.constant 0 : i32
    return %c0_i32, %c0_i32_0 : i32, i32
  }
  func.func @transform_4(%arg0: i32) -> (i32, i32, i32) {
    %c0_i32 = arith.constant 0 : i32
    %c0_i32_0 = arith.constant 0 : i32
    %c0_i32_1 = arith.constant 0 : i32
    %c0_i32_2 = arith.constant 0 : i32
    return %c0_i32, %c0_i32_0, %c0_i32_1 : i32, i32, i32
  }
}

</mosaic_0001>

<bundles_post_ra>
// kernel: tpu_custom_call.1
= control target key start
LH: loop header
LB: loop body
LE: loop exit
PB: predicated region body
PF: predicated region fallthrough
CT: control target
= control target key end

     0   :  { %vm33_vm0 = vcmask 785408   ;;  %vm428_vm1 = vcmask 261120   ;;  %s1230_s1 = inlined_call_operand.vmem [shape: f32[96,32], index: 1, kind: input, shape index: {}]   ;;  %s1231_s0 = inlined_call_operand.vmem [shape: f32[32,96], index: 0, kind: input, shape index: {}]   ;;  %s1232_s2 = inlined_call_operand.vmem [shape: f32[1,32], index: 2, kind: input, shape index: {}]   ;;  %s1233_s3 = inlined_call_operand.vmem [shape: f32[1,32], index: 3, kind: input, shape index: {}]   ;;  %s1234_s4 = inlined_call_operand.vmem [shape: f32[2,32,16], index: 4, kind: output, shape index: {}]  }
   0x1   :  { %v32_v0 = vld [vmem:[%s1230_s1 + $0x58] sm:$0xff]  ;;  %v31_v1 = vld [vmem:[%s1230_s1 + $0x50] sm:$0xff]  ;;  %v30_v2 = vld [vmem:[%s1230_s1 + $0x48] sm:$0xff] }
   0x2   :  { %v860_v3 = vand.u32 4294901760, %v32_v0  ;;  %v862_v4 = vand.u32 4294901760, %v31_v1  ;;  %v864_v5 = vand.u32 4294901760, %v30_v2  ;;  %v29_v6 = vld [vmem:[%s1230_s1 + $0x40] sm:$0xff]  ;;  %v28_v7 = vld [vmem:[%s1230_s1 + $0x38] sm:$0xff]  ;;  %v27_v8 = vld [vmem:[%s1230_s1 + $0x30] sm:$0xff] }
   0x3   :  { %v875_v9 = vand.u32 4294901760, %v29_v6  ;;  %v877_v10 = vand.u32 4294901760, %v28_v7  ;;  %v879_v11 = vand.u32 4294901760, %v27_v8  ;;  %v26_v12 = vld [vmem:[%s1230_s1 + $0x28] sm:$0xff]  ;;  %v25_v13 = vld [vmem:[%s1230_s1 + $0x20] sm:$0xff]  ;;  %v24_v18 = vld [vmem:[%s1230_s1 + $0x18] sm:$0xff] }
   0x4   :  { %51 = vmatpush.msra.mxu0 %v860_v3  ;;  %v112_v14 = vsub.f32 %v32_v0, %v860_v3  ;;  %v118_v15 = vsub.f32 %v31_v1, %v862_v4  ;;  %266 = vmatpush.msra.mxu3 %v860_v3  ;;  %v124_v16 = vsub.f32 %v30_v2, %v864_v5  ;;  %v892_v17 = vand.u32 4294901760, %v26_v12  ;;  %v23_v29 = vld [vmem:[%s1230_s1 + $0x10] sm:$0xff]  ;;  %v22_v36 = vld [vmem:[%s1230_s1 + $0x8] sm:$0xff]  ;;  %v17_v41 = vld [vmem:[%s1231_s0] sm:$0xff] }
   0x5   :  { %v130_v19 = vsub.f32 %v29_v6, %v875_v9  ;;  %v136_v20 = vsub.f32 %v28_v7, %v877_v10  ;;  %v900_v21 = vsub.f32 %v27_v8, %v879_v11  ;;  %v909_v25 = vand.u32 4294901760, %v25_v13  ;;  %v21_v43 = vld [vmem:[%s1230_s1] sm:$0xff]  ;;  %v18_v48 = vld [vmem:[%s1231_s0 + $0x8] sm:$0xff]  ;;  %v19_v0 = vld [vmem:[%s1231_s0 + $0x10] sm:$0xff] }
   0x6   :  { %53 = vmatpush.msra.mxu0 %v862_v4  ;;  %206 = vmatpush.msra.mxu2 %v112_v14  ;;  %v903_v22 = vand.u32 4294901760, %v112_v14  ;;  %v905_v23 = vand.u32 4294901760, %v118_v15  ;;  %v907_v24 = vand.u32 4294901760, %v124_v16  ;;  %v915_v27 = vsub.f32 %v26_v12, %v892_v17 }
   0x7   :  { %268 = vmatpush.msra.mxu3 %v862_v4  ;;  %v912_v26 = vand.u32 4294901760, %v130_v19  ;;  %v917_v28 = vand.u32 4294901760, %v24_v18  ;;  %v926_v33 = vand.u32 4294901760, %v136_v20  ;;  %v931_v35 = vand.u32 4294901760, %v900_v21 }
   0x8   :  { %55 = vmatpush.msra.mxu0 %v864_v5  ;;  %209 = vmatpush.msra.mxu2 %v118_v15  ;;  %v114_v30 = vsub.f32 %v112_v14, %v903_v22  ;;  %v120_v31 = vsub.f32 %v118_v15, %v905_v23  ;;  %v126_v32 = vsub.f32 %v124_v16, %v907_v24  ;;  %v938_v40 = vand.u32 4294901760, %v23_v29 }
   0x9   :  { %270 = vmatpush.msra.mxu3 %v864_v5  ;;  %v132_v34 = vsub.f32 %v130_v19, %v912_v26  ;;  %v154_v39 = vsub.f32 %v25_v13, %v909_v25  ;;  %v945_v42 = vand.u32 4294901760, %v915_v27  ;;  %v138_v45 = vsub.f32 %v136_v20, %v926_v33 }
   0xa   :  { %57 = vmatpush.msra.mxu0 %v875_v9  ;;  %212 = vmatpush.msra.mxu2 %v124_v16  ;;  %v115_v37 = vand.u32 4294901760, %v114_v30  ;;  %v121_v38 = vand.u32 4294901760, %v120_v31  ;;  %v127_v44 = vand.u32 4294901760, %v126_v32  ;;  %v160_v46 = vsub.f32 %v24_v18, %v917_v28  ;;  %v20_v32 = vld [vmem:[%s1231_s0 + $0x18] sm:$0xff] }
   0xb   :  { %272 = vmatpush.msra.mxu3 %v875_v9  ;;  %v953_v47 = vand.u32 4294901760, %v22_v36  ;;  %v133_v49 = vand.u32 4294901760, %v132_v34  ;;  %v144_v50 = vsub.f32 %v900_v21, %v931_v35  ;;  %v35_v51 = vsel %vm33_vm0, %v17_v41, 0 }
   0xc   :  { %59 = vmatpush.msra.mxu0 %v877_v10  ;;  %116 = vmatpush.msra.mxu1 %v115_v37  ;;  %v166_v52 = vsub.f32 %v23_v29, %v938_v40  ;;  %v964_v53 = vand.u32 4294901760, %v21_v43  ;;  %v966_v54 = vand.u32 4294901760, %v154_v39  ;;  %v968_v55 = vand.u32 4294901760, %v35_v51 }
   0xd   :  { %215 = vmatpush.msra.mxu2 %v130_v19  ;;  %274 = vmatpush.msra.mxu3 %v877_v10  ;;  %v150_v56 = vsub.f32 %v915_v27, %v945_v42  ;;  %v38_v57 = vsel %vm33_vm0, %v18_v48, 0  ;;  %v139_v58 = vand.u32 4294901760, %v138_v45  ;;  %v172_v59 = vsub.f32 %v22_v36, %v953_v47 }
   0xe   :  { %61 = vmatpush.msra.mxu0 %v879_v11  ;;  %122 = vmatpush.msra.mxu1 %v121_v38  ;;  %v75_v60 = vsub.f32 %v35_v51, %v968_v55  ;;  %v977_v61 = vand.u32 4294901760, %v160_v46  ;;  %v145_v62 = vand.u32 4294901760, %v144_v50  ;;  %v981_v63 = vand.u32 4294901760, %v38_v57 }
   0xf   :  { %218 = vmatpush.msra.mxu2 %v136_v20  ;;  %276 = vmatpush.msra.mxu3 %v879_v11  ;;  %v156_v1 = vsub.f32 %v154_v39, %v966_v54  ;;  %v178_v6 = vsub.f32 %v21_v43, %v964_v53  ;;  %v989_v7 = vand.u32 4294901760, %v166_v52  ;;  %v151_v8 = vand.u32 4294901760, %v150_v56 }
  0x10   :  { %63 = vmatpush.msra.mxu0 %v892_v17  ;;  %128 = vmatpush.msra.mxu1 %v127_v44  ;;  %v76_v2 = vand.u32 4294901760, %v75_v60  ;;  %v994_v12 = vsub.f32 %v38_v57, %v981_v63  ;;  %v162_v14 = vsub.f32 %v160_v46, %v977_v61  ;;  %v998_v15 = vand.u32 4294901760, %v172_v59 }
  0x11   :  { %221 = vmatpush.msra.mxu2 %v900_v21  ;;  %278 = vmatpush.msra.mxu3 %v892_v17  ;;  %v41_v16 = vsel %vm33_vm0, %v19_v0, 0  ;;  %v157_v18 = vand.u32 4294901760, %v156_v1  ;;  %v168_v19 = vsub.f32 %v166_v52, %v989_v7  ;;  %v1004_v20 = vand.u32 4294901760, %v178_v6 }
  0x12   :  { %65 = vmatpush.msra.mxu0 %v909_v25  ;;  %134 = vmatpush.msra.mxu1 %v133_v49  ;;  %v77_v13 = vsub.f32 %v75_v60, %v76_v2  ;;  %v1008_v29 = vand.u32 4294901760, %v41_v16  ;;  %v163_v30 = vand.u32 4294901760, %v162_v14  ;;  %v174_v31 = vsub.f32 %v172_v59, %v998_v15 }
  0x13   :  { %224 = vmatpush.msra.mxu2 %v915_v27  ;;  %280 = vmatpush.msra.mxu3 %v909_v25  ;;  %v84_v27 = vand.u32 4294901760, %v994_v12  ;;  %v169_v34 = vand.u32 4294901760, %v168_v19  ;;  %v180_v36 = vsub.f32 %v178_v6, %v1004_v20  ;;  %v44_v41 = vsel %vm33_vm0, %v20_v32, 0 }
  0x14   :  { %67 = vmatpush.msra.mxu0 %v917_v28  ;;  %140 = vmatpush.msra.mxu1 %v139_v58  ;;  %v78_v21 = vand.u32 4294901760, %v77_v13  ;;  %v91_v38 = vsub.f32 %v41_v16, %v1008_v29  ;;  %v825_v56 = vmov 16.0  }
  0x15   :  { %227 = vmatpush.msra.mxu2 %v154_v39  ;;  %282 = vmatpush.msra.mxu3 %v917_v28  ;;  %v85_v37 = vsub.f32 %v994_v12, %v84_v27  ;;  %v175_v39 = vand.u32 4294901760, %v174_v31  ;;  %v181_v43 = vand.u32 4294901760, %v180_v36  ;;  %811 = vrcp.f32 %v825_v56 }
  0x16   :  { %69 = vmatpush.msra.mxu0 %v938_v40  ;;  %146 = vmatpush.msra.mxu1 %v145_v62  ;;  %v92_v45 = vand.u32 4294901760, %v91_v38 }
  0x17   :  { %230 = vmatpush.msra.mxu2 %v160_v46  ;;  %284 = vmatpush.msra.mxu3 %v938_v40  ;;  %v86_v44 = vand.u32 4294901760, %v85_v37  ;;  %v1024_v46 = vand.u32 4294901760, %v44_v41 }
  0x18   :  { %71 = vmatpush.msra.mxu0 %v953_v47  ;;  %152 = vmatpush.msra.mxu1 %v151_v8  ;;  %v93_v48 = vsub.f32 %v91_v38, %v92_v45 }
  0x19   :  { %233 = vmatpush.msra.mxu2 %v166_v52  ;;  %286 = vmatpush.msra.mxu3 %v953_v47  ;;  %v99_v49 = vsub.f32 %v44_v41, %v1024_v46 }
  0x1a   :  { %73 = vmatpush.msra.mxu0 %v964_v53  ;;  %158 = vmatpush.msra.mxu1 %v157_v18 }
  0x1b   :  { %236 = vmatpush.msra.mxu2 %v172_v59  ;;  %79 = vmatmul.f32.vlgmr.msra.gmra.mxu0 %v78_v21  ;;  %v812_v1 = vpop.eup %811 }
  0x1c   :  { %164 = vmatpush.msra.mxu1 %v163_v30  ;;  %288 = vmatpush.msra.mxu3 %v964_v53  ;;  %v448_v16 = vmul.f32 16.0, %v812_v1  ;;  %vm452_vm2 = vweird.f32 %v812_v1 }
  0x1d   :  { %239 = vmatpush.msra.mxu2 %v178_v6  ;;  %292 = vmatmul.f32.vlgmr.msra.gmra.mxu3 %v76_v2 }
  0x1e   :  { %242 = vmatmul.f32.vlgmr.msra.gmra.mxu2 %v75_v60  ;;  %170 = vmatpush.msra.mxu1 %v169_v34  ;;  %v449_v34 = vsub.f32 1.0, %v448_v16 }
  0x1f   :  { %783 = vmatpush.msrb.mxu2 %v903_v22  ;;  %795 = vmatpush.msrb.mxu3 %v860_v3 }
  0x20   :  { %176 = vmatpush.msra.mxu1 %v175_v39  ;;  %321 = vmatpush.msrb.mxu0 %v903_v22  ;;  %v94_v22 = vand.u32 4294901760, %v93_v48 }
  0x21   :  { %784 = vmatpush.msrb.mxu2 %v905_v23  ;;  %796 = vmatpush.msrb.mxu3 %v862_v4 }
  0x22   :  { %182 = vmatpush.msra.mxu1 %v181_v43  ;;  %325 = vmatpush.msrb.mxu0 %v905_v23  ;;  %v100_v23 = vand.u32 4294901760, %v99_v49  ;;  %v450_v43 = vmul.f32 %v812_v1, %v449_v34 }
  0x23   :  { %87 = vmatmul.f32.gmra.mxu0 %v86_v44  ;;  %184 = vmatmul.f32.vlgmr.msra.gmra.mxu1 %v968_v55 }
  0x24   :  { %785 = vmatpush.msrb.mxu2 %v907_v24  ;;  %388 = vmatpush.msrb.mxu1 %v860_v3  ;;  %v101_v3 = vsub.f32 %v99_v49, %v100_v23 }
  0x25   :  { %797 = vmatpush.msrb.mxu3 %v864_v5  ;;  %329 = vmatpush.msrb.mxu0 %v907_v24 }
  0x26   :  { %247 = vmatmul.f32.gmra.mxu2 %v994_v12  ;;  %298 = vmatmul.f32.gmra.mxu3 %v84_v27 }
  0x27   :  { %786 = vmatpush.msrb.mxu2 %v912_v26  ;;  %798 = vmatpush.msrb.mxu3 %v875_v9 }
  0x28   :  { %390 = vmatpush.msrb.mxu1 %v862_v4  ;;  %333 = vmatpush.msrb.mxu0 %v912_v26  ;;  %v102_v4 = vand.u32 4294901760, %v101_v3 }
  0x29   :  { %787 = vmatpush.msrb.mxu2 %v926_v33  ;;  %799 = vmatpush.msrb.mxu3 %v877_v10 }
  0x2a   :  { %392 = vmatpush.msrb.mxu1 %v864_v5  ;;  %337 = vmatpush.msrb.mxu0 %v926_v33 }
  0x2b   :  { %95 = vmatmul.f32.gmra.mxu0 %v94_v22  ;;  %188 = vmatmul.f32.gmra.mxu1 %v981_v63 }
  0x2c   :  { %788 = vmatpush.msrb.mxu2 %v931_v35  ;;  %394 = vmatpush.msrb.mxu1 %v875_v9 }
  0x2d   :  { %800 = vmatpush.msrb.mxu3 %v879_v11  ;;  %341 = vmatpush.msrb.mxu0 %v931_v35 }
  0x2e   :  { %252 = vmatmul.f32.gmra.mxu2 %v91_v38  ;;  %304 = vmatmul.f32.gmra.mxu3 %v92_v45 }
  0x2f   :  { %789 = vmatpush.msrb.mxu2 %v945_v42  ;;  %801 = vmatpush.msrb.mxu3 %v892_v17 }
  0x30   :  { %345 = vmatpush.msrb.mxu0 %v945_v42  ;;  %396 = vmatpush.msrb.mxu1 %v877_v10 }
  0x31   :  { %790 = vmatpush.msrb.mxu2 %v966_v54  ;;  %802 = vmatpush.msrb.mxu3 %v909_v25 }
  0x32   :  { %349 = vmatpush.msrb.mxu0 %v966_v54  ;;  %398 = vmatpush.msrb.mxu1 %v879_v11 }
  0x33   :  { %103 = vmatmul.f32.gmra.mxu0 %v102_v4  ;;  %192 = vmatmul.f32.gmra.mxu1 %v1008_v29 }
  0x34   :  { %791 = vmatpush.msrb.mxu2 %v977_v61  ;;  %353 = vmatpush.msrb.mxu0 %v977_v61 }
  0x35   :  { %400 = vmatpush.msrb.mxu1 %v892_v17  ;;  %803 = vmatpush.msrb.mxu3 %v917_v28 }
  0x36   :  { %257 = vmatmul.f32.gmra.mxu2 %v99_v49  ;;  %357 = vmatpush.msrb.mxu0 %v989_v7  ;;  %v451_v49 = vadd.f32 %v812_v1, %v450_v43 }
  0x37   :  { %792 = vmatpush.msrb.mxu2 %v989_v7  ;;  %310 = vmatmul.f32.gmra.mxu3 %v100_v23 }
  0x38   :  { %804 = vmatpush.msrb.mxu3 %v938_v40  ;;  %361 = vmatpush.msrb.mxu0 %v998_v15 }
  0x39   :  { %793 = vmatpush.msrb.mxu2 %v998_v15  ;;  %402 = vmatpush.msrb.mxu1 %v909_v25 }
  0x3a   :  { %365 = vmatpush.msrb.mxu0 %v1004_v20  ;;  %805 = vmatpush.msrb.mxu3 %v953_v47 }
  0x3b   :  { %196 = vmatmul.f32.gmra.mxu1 %v1024_v46  ;;  %794 = vmatpush.msrb.mxu2 %v1004_v20 }
  0x3c   :  { %367 = vmatmul.f32.vlgmr.msrb.gmra.mxu0 %v968_v55  ;;  %404 = vmatpush.msrb.mxu1 %v917_v28 }
  0x3d   :  { %806 = vmatpush.msrb.mxu3 %v964_v53 }
  0x3e   :  { %375 = vmatmul.f32.vlgmr.msrb.gmra.mxu2 %v1008_v29  ;;  %406 = vmatpush.msrb.mxu1 %v938_v40 }
  0x3f   :  { %420 = vmatmul.f32.vlgmr.msrb.gmra.mxu3 %v1008_v29 }
  0x40   :  { %408 = vmatpush.msrb.mxu1 %v953_v47 }
  0x42   :  { %410 = vmatpush.msrb.mxu1 %v964_v53 }
  0x43   :  { %412 = vmatmul.f32.vlgmr.msrb.gmra.mxu1 %v968_v55 }
  0x44   :  { %371 = vmatmul.f32.gmra.mxu0 %v981_v63 }
  0x46   :  { %379 = vmatmul.f32.gmra.mxu2 %v1024_v46 }
  0x47   :  { %424 = vmatmul.f32.gmra.mxu3 %v1024_v46 }
  0x4b   :  { %416 = vmatmul.f32.gmra.mxu1 %v981_v63 }
  0x98   :  { %v80_v5 = vpop.f32.mrf.mxu0 }
  0xa0   :  { %v88_v9 = vpop.f32.mrf.mxu0  ;;  %v185_v10 = vpop.f32.mrf.mxu1 }
  0xa1   :  { %v243_v11 = vpop.f32.mrf.mxu2  ;;  %v293_v17 = vpop.f32.mrf.mxu3  ;;  %v186_v53 = vadd.f32 %v185_v10, %v80_v5  ;;  %v453_v5 = vsel %vm452_vm2, %v812_v1, %v451_v49 }
  0xa3   :  { %v244_v57 = vadd.f32 %v243_v11, %v186_v53 }
  0xa5   :  { %v294_v0 = vadd.f32 %v293_v17, %v244_v57 }
  0xa8   :  { %v96_v24 = vpop.f32.mrf.mxu0  ;;  %v189_v25 = vpop.f32.mrf.mxu1 }
  0xa9   :  { %v248_v26 = vpop.f32.mrf.mxu2  ;;  %v299_v28 = vpop.f32.mrf.mxu3  ;;  %v190_v55 = vadd.f32 %v189_v25, %v88_v9 }
  0xab   :  { %v249_v61 = vadd.f32 %v248_v26, %v190_v55 }
  0xad   :  { %v300_v8 = vadd.f32 %v299_v28, %v249_v61 }
  0xb0   :  { %v104_v33 = vpop.f32.mrf.mxu0  ;;  %v193_v35 = vpop.f32.mrf.mxu1 }
  0xb1   :  { %v253_v40 = vpop.f32.mrf.mxu2  ;;  %v305_v42 = vpop.f32.mrf.mxu3  ;;  %v194_v54 = vadd.f32 %v193_v35, %v96_v24 }
  0xb3   :  { %v254_v58 = vadd.f32 %v253_v40, %v194_v54 }
  0xb5   :  { %v306_v2 = vadd.f32 %v305_v42, %v254_v58 }
  0xb8   :  { %v197_v47 = vpop.f32.mrf.mxu1 }
  0xb9   :  { %v258_v50 = vpop.f32.mrf.mxu2  ;;  %v368_v51 = vpop.f32.mrf.mxu0  ;;  %v198_v59 = vadd.f32 %v197_v47, %v104_v33 }
  0xba   :  { %v311_v52 = vpop.f32.mrf.mxu3  ;;  %v369_v12 = vadd.f32 %v368_v51, %v294_v0 }
  0xbb   :  { %v259_v6 = vadd.f32 %v258_v50, %v198_v59 }
  0xbd   :  { %v312_v18 = vadd.f32 %v311_v52, %v259_v6 }
  0xc0   :  { %v413_v60 = vpop.f32.mrf.mxu1 }
  0xc1   :  { %v376_v62 = vpop.f32.mrf.mxu2  ;;  %v372_v7 = vpop.f32.mrf.mxu0  ;;  %v414_v15 = vadd.f32 %v413_v60, %v369_v12 }
  0xc2   :  { %v421_v63 = vpop.f32.mrf.mxu3  ;;  %v377_v13 = vadd.f32 %v376_v62, %v306_v2  ;;  %v373_v14 = vadd.f32 %v372_v7, %v300_v8 }
  0xc3   :  { %v429_v31 = vsel %vm428_vm1, %v414_v15, 0.0 }
  0xc4   :  { %v422_v27 = vadd.f32 %v421_v63, %v377_v13 }
  0xc6   :  { %v438_v38 = vsel %vm428_vm1, %v422_v27, 0.0 }
  0xc8   :  { %v417_v19 = vpop.f32.mrf.mxu1 }
  0xc9   :  { %v380_v20 = vpop.f32.mrf.mxu2  ;;  %v418_v21 = vadd.f32 %v417_v19, %v373_v14 }
  0xca   :  { %v381_v29 = vadd.f32 %v380_v20, %v312_v18  ;;  %v425_v30 = vpop.f32.mrf.mxu3 }
  0xcb   :  { %v430_v32 = vsel %vm428_vm1, %v418_v21, 0.0 }
  0xcc   :  { %v431_v36 = vadd.f32 %v430_v32, %v429_v31  ;;  %v426_v37 = vadd.f32 %v425_v30, %v381_v29  ;;  %v809_v32 = vld [vmem:[%s1232_s2] ss:$0 sm:$0xff] }
  0xce   :  { %v432_v39 = vrot.slane %v431_v36, 4  ;;  %v439_v41 = vsel %vm428_vm1, %v426_v37, 0.0 }
  0xcf   :  { %v440_v44 = vadd.f32 %v439_v41, %v438_v38  ;;  %v810_v41 = vld [vmem:[%s1233_s3] ss:$0 sm:$0xff] }
  0xd0   :  { %v433_v45 = vadd.f32 %v432_v39, %v431_v36 }
  0xd1   :  { %v441_v46 = vrot.slane %v440_v44, 4 }
  0xd2   :  { %v434_v48 = vrot.slane %v433_v45, 2 }
  0xd3   :  { %v442_v22 = vadd.f32 %v441_v46, %v440_v44 }
  0xd4   :  { %v435_v23 = vadd.f32 %v434_v48, %v433_v45 }
  0xd5   :  { %v443_v3 = vrot.slane %v442_v22, 2 }
  0xd6   :  { %v436_v4 = vrot.slane %v435_v23, 1 }
  0xd7   :  { %v444_v9 = vadd.f32 %v443_v3, %v442_v22 }
  0xd8   :  { %v437_v10 = vadd.f32 %v436_v4, %v435_v23 }
  0xd9   :  { %v445_v11 = vrot.slane %v444_v9, 1 }
  0xda   :  { %v454_v17 = vmul.f32 %v453_v5, %v437_v10 }
  0xdb   :  { %v446_v24 = vadd.f32 %v445_v11, %v444_v9 }
  0xdc   :  { %v456_v25 = vsub.f32 %v414_v15, %v454_v17  ;;  %v457_v26 = vsub.f32 %v418_v21, %v454_v17 }
  0xdd   :  { %v455_v28 = vmul.f32 %v453_v5, %v446_v24 }
  0xde   :  { %v460_v33 = vmul.f32 %v456_v25, %v456_v25  ;;  %v461_v35 = vmul.f32 %v457_v26, %v457_v26 }
  0xdf   :  { %v458_v40 = vsub.f32 %v422_v27, %v455_v28  ;;  %v459_v42 = vsub.f32 %v426_v37, %v455_v28 }
  0xe0   :  { %v464_v47 = vsel %vm428_vm1, %v460_v33, 0.0  ;;  %v465_v50 = vsel %vm428_vm1, %v461_v35, 0.0 }
  0xe1   :  { %v466_v51 = vadd.f32 %v465_v50, %v464_v47  ;;  %v462_v52 = vmul.f32 %v458_v40, %v458_v40  ;;  %v463_v53 = vmul.f32 %v459_v42, %v459_v42 }
  0xe3   :  { %v467_v54 = vrot.slane %v466_v51, 4  ;;  %v473_v55 = vsel %vm428_vm1, %v462_v52, 0.0  ;;  %v474_v56 = vsel %vm428_vm1, %v463_v53, 0.0 }
  0xe4   :  { %v475_v57 = vadd.f32 %v474_v56, %v473_v55 }
  0xe5   :  { %v468_v58 = vadd.f32 %v467_v54, %v466_v51 }
  0xe6   :  { %v476_v59 = vrot.slane %v475_v57, 4 }
  0xe7   :  { %v469_v60 = vrot.slane %v468_v58, 2 }
  0xe8   :  { %v477_v61 = vadd.f32 %v476_v59, %v475_v57 }
  0xe9   :  { %v470_v62 = vadd.f32 %v469_v60, %v468_v58 }
  0xea   :  { %v478_v63 = vrot.slane %v477_v61, 2 }
  0xeb   :  { %v471_v0 = vrot.slane %v470_v62, 1 }
  0xec   :  { %v479_v1 = vadd.f32 %v478_v63, %v477_v61 }
  0xed   :  { %v472_v2 = vadd.f32 %v471_v0, %v470_v62 }
  0xee   :  { %v480_v6 = vrot.slane %v479_v1, 1 }
  0xef   :  { %v482_v7 = vmul.f32 %v472_v2, %v453_v5 }
  0xf0   :  { %v481_v8 = vadd.f32 %v480_v6, %v479_v1 }
  0xf1   :  { %v484_v12 = vadd.f32 1e-05, %v482_v7 }
  0xf2   :  { %v483_v13 = vmul.f32 %v481_v8, %v453_v5 }
  0xf3   :  { %813 = vrsqrt.f32 %v484_v12  ;;  %vm492_vm4 = vweird.f32 %v484_v12 }
  0xf4   :  { %v485_v14 = vadd.f32 1e-05, %v483_v13 }
  0xf6   :  { %815 = vrsqrt.f32 %v485_v14  ;;  %vm502_vm7 = vweird.f32 %v485_v14 }
  0xf9   :  { %v814_v15 = vpop.eup %813 }
  0xfa   :  { %v487_v16 = vmul.f32 %v814_v15, %v484_v12  ;;  %vm493_vm3 = vweird.f32 %v814_v15 }
  0xfb   :  { %vm494_vm5 = vmor %vm492_vm4, %vm493_vm3 }
  0xfc   :  { %v816_v18 = vpop.eup %815  ;;  %v488_v19 = vmul.f32 %v814_v15, %v487_v16 }
  0xfd   :  { %v497_v20 = vmul.f32 %v816_v18, %v485_v14  ;;  %vm503_vm6 = vweird.f32 %v816_v18 }
  0xfe   :  { %v489_v21 = vmul.f32 0.5, %v488_v19  ;;  %vm504_vm8 = vmor %vm502_vm7, %vm503_vm6 }
  0xff   :  { %v498_v27 = vmul.f32 %v816_v18, %v497_v20 }
 0x100   :  { %v490_v29 = vsub.f32 1.5, %v489_v21 }
 0x101   :  { %v499_v30 = vmul.f32 0.5, %v498_v27 }
 0x102   :  { %v491_v31 = vmul.f32 %v814_v15, %v490_v29 }
 0x103   :  { %v500_v34 = vsub.f32 1.5, %v499_v30 }
 0x104   :  { %v495_v36 = vsel %vm494_vm5, %v814_v15, %v491_v31 }
 0x105   :  { %v506_v37 = vmul.f32 %v495_v36, %v456_v25  ;;  %v507_v38 = vmul.f32 %v495_v36, %v457_v26  ;;  %v501_v39 = vmul.f32 %v816_v18, %v500_v34 }
 0x107   :  { %v515_v43 = vmul.f32 %v809_v32, %v507_v38  ;;  %v505_v44 = vsel %vm504_vm8, %v816_v18, %v501_v39  ;;  %v514_v45 = vmul.f32 %v809_v32, %v506_v37 }
 0x108   :  { %v508_v46 = vmul.f32 %v505_v44, %v458_v40  ;;  %v509_v48 = vmul.f32 %v505_v44, %v459_v42 }
 0x109   :  { %v1100_v49 = vadd.f32 %v810_v41, %v514_v45  ;;  %v1102_v22 = vadd.f32 %v810_v41, %v515_v43 }
 0x10a   :  { %v517_v23 = vmul.f32 %v809_v32, %v509_v48  ;;  %v516_v3 = vmul.f32 %v809_v32, %v508_v46 }
 0x10b   :  { %v1105_v4 = vmul.f32 0.70710677, %v1100_v49  ;;  %v1108_v5 = vmul.f32 0.70710677, %v1102_v22 }
 0x10c   :  { %v1110_v9 = vadd.f32 %v810_v41, %v516_v3  ;;  %v1112_v10 = vadd.f32 %v810_v41, %v517_v23 }
 0x10d   :  { %v534_v11 = vmul.f32 %v1105_v4, %v1105_v4  ;;  %v574_v17 = vmul.f32 %v1108_v5, %v1108_v5 }
 0x10e   :  { %v1119_v24 = vmul.f32 0.70710677, %v1110_v9  ;;  %v1122_v25 = vmul.f32 0.70710677, %v1112_v10 }
 0x10f   :  { %v1124_v26 = vmin.f32 %v534_v11, 16.0  ;;  %v1126_v28 = vmin.f32 %v574_v17, 16.0 }
 0x110   :  { %v614_v33 = vmul.f32 %v1119_v24, %v1119_v24  ;;  %v654_v35 = vmul.f32 %v1122_v25, %v1122_v25 }
 0x111   :  { %v536_v40 = vmul.f32 2.1237322e-06, %v1124_v26  ;;  %v547_v42 = vmul.f32 3.8918573e-05, %v1124_v26  ;;  %v576_v47 = vmul.f32 2.1237322e-06, %v1126_v28 }
 0x112   :  { %v1135_v50 = vmin.f32 %v614_v33, 16.0  ;;  %v587_v51 = vmul.f32 3.8918573e-05, %v1126_v28  ;;  %v1138_v52 = vmin.f32 %v654_v35, 16.0 }
 0x113   :  { %v537_v53 = vadd.f32 0.00028619796, %v536_v40  ;;  %v548_v54 = vadd.f32 0.001143296, %v547_v42  ;;  %v577_v55 = vadd.f32 0.00028619796, %v576_v47 }
 0x114   :  { %v616_v56 = vmul.f32 2.1237322e-06, %v1135_v50  ;;  %v627_v57 = vmul.f32 3.8918573e-05, %v1135_v50  ;;  %v588_v58 = vadd.f32 0.001143296, %v587_v51 }
 0x115   :  { %v538_v59 = vmul.f32 %v537_v53, %v1124_v26  ;;  %v549_v60 = vmul.f32 %v548_v54, %v1124_v26  ;;  %v578_v61 = vmul.f32 %v577_v55, %v1126_v28  ;;  %v656_v62 = vmul.f32 2.1237322e-06, %v1138_v52 }
 0x116   :  { %v617_v63 = vadd.f32 0.00028619796, %v616_v56  ;;  %v628_v0 = vadd.f32 0.001143296, %v627_v57  ;;  %v589_v1 = vmul.f32 %v588_v58, %v1126_v28  ;;  %v667_v2 = vmul.f32 3.8918573e-05, %v1138_v52 }
 0x117   :  { %v539_v6 = vadd.f32 0.0036580483, %v538_v59  ;;  %v550_v7 = vadd.f32 0.014752088, %v549_v60  ;;  %v579_v8 = vadd.f32 0.0036580483, %v578_v61 }
 0x118   :  { %v618_v12 = vmul.f32 %v617_v63, %v1135_v50  ;;  %v629_v13 = vmul.f32 %v628_v0, %v1135_v50  ;;  %v590_v14 = vadd.f32 0.014752088, %v589_v1  ;;  %v657_v15 = vadd.f32 0.00028619796, %v656_v62 }
 0x119   :  { %v540_v16 = vmul.f32 %v539_v6, %v1124_v26  ;;  %v551_v18 = vmul.f32 %v550_v7, %v1124_v26  ;;  %v580_v19 = vmul.f32 %v579_v8, %v1126_v28  ;;  %v668_v20 = vadd.f32 0.001143296, %v667_v2 }
 0x11a   :  { %v619_v21 = vadd.f32 0.0036580483, %v618_v12  ;;  %v630_v27 = vadd.f32 0.014752088, %v629_v13  ;;  %v591_v29 = vmul.f32 %v590_v14, %v1126_v28  ;;  %v658_v30 = vmul.f32 %v657_v15, %v1138_v52 }
 0x11b   :  { %v541_v31 = vadd.f32 0.05243302, %v540_v16  ;;  %v552_v32 = vadd.f32 0.112945676, %v551_v18  ;;  %v581_v34 = vadd.f32 0.05243302, %v580_v19  ;;  %v669_v36 = vmul.f32 %v668_v20, %v1138_v52 }
 0x11c   :  { %v620_v37 = vmul.f32 %v619_v21, %v1135_v50  ;;  %v631_v38 = vmul.f32 %v630_v27, %v1135_v50  ;;  %v592_v39 = vadd.f32 0.112945676, %v591_v29  ;;  %v659_v44 = vadd.f32 0.0036580483, %v658_v30 }
 0x11d   :  { %v542_v41 = vmul.f32 %v541_v31, %v1124_v26  ;;  %v553_v43 = vmul.f32 %v552_v32, %v1124_v26  ;;  %v670_v45 = vadd.f32 0.014752088, %v669_v36  ;;  %v582_v11 = vmul.f32 %v581_v34, %v1126_v28 }
 0x11e   :  { %v632_v46 = vadd.f32 0.112945676, %v631_v38  ;;  %v593_v48 = vmul.f32 %v592_v39, %v1126_v28  ;;  %v621_v3 = vadd.f32 0.05243302, %v620_v37  ;;  %v660_v47 = vmul.f32 %v659_v44, %v1138_v52 }
 0x11f   :  { %v554_v23 = vadd.f32 0.4994258, %v553_v43  ;;  %v671_v17 = vmul.f32 %v670_v45, %v1138_v52  ;;  %v543_v40 = vadd.f32 0.18741608, %v542_v41  ;;  %v583_v57 = vadd.f32 0.18741608, %v582_v11 }
 0x120   :  { %v633_v33 = vmul.f32 %v632_v46, %v1135_v50  ;;  %v594_v35 = vadd.f32 0.4994258, %v593_v48  ;;  %v622_v56 = vmul.f32 %v621_v3, %v1135_v50  ;;  %v661_v61 = vadd.f32 0.05243302, %v660_v47 }
 0x121   :  { %v555_v42 = vmul.f32 %v554_v23, %v1124_v26  ;;  %v672_v54 = vadd.f32 0.112945676, %v671_v17  ;;  %v544_v60 = vmul.f32 %v543_v40, %v1124_v26  ;;  %v584_v1 = vmul.f32 %v583_v57, %v1126_v28 }
 0x122   :  { %v634_v51 = vadd.f32 0.4994258, %v633_v33  ;;  %v595_v53 = vmul.f32 %v594_v35, %v1126_v28  ;;  %v623_v0 = vadd.f32 0.18741608, %v622_v56  ;;  %v662_v6 = vmul.f32 %v661_v61, %v1138_v52 }
 0x123   :  { %v556_v55 = vadd.f32 1.0, %v555_v42  ;;  %v673_v63 = vmul.f32 %v672_v54, %v1138_v52  ;;  %v545_v2 = vadd.f32 1.1283791, %v544_v60  ;;  %v585_v13 = vadd.f32 1.1283791, %v584_v1 }
 0x124   :  { %v635_v58 = vmul.f32 %v634_v51, %v1135_v50  ;;  %v596_v59 = vadd.f32 1.0, %v595_v53  ;;  %v624_v12 = vmul.f32 %v623_v0, %v1135_v50  ;;  %v663_v19 = vadd.f32 0.18741608, %v662_v6 }
 0x125   :  { %817 = vrcp.f32 %v556_v55  ;;  %v674_v7 = vadd.f32 0.4994258, %v673_v63  ;;  %v566_v26 = vand.u32 2147483647, %v556_v55  ;;  %v546_v18 = vmul.f32 %v545_v2, %v1105_v4 }
 0x126   :  { %v636_v62 = vadd.f32 1.0, %v635_v58  ;;  %819 = vrcp.f32 %v596_v59  ;;  %vm562_vm9 = vweird.f32 %v556_v55  ;;  %v568_v21 = vand.u32 2147483648, %v556_v55 }
 0x127   :  { %v675_v15 = vmul.f32 %v674_v7, %v1138_v52  ;;  %v625_v29 = vadd.f32 1.1283791, %v624_v12  ;;  %v586_v31 = vmul.f32 %v585_v13, %v1108_v5  ;;  %vm1179_vm11 = vcmp.eq.f32.partialorder %v566_v26, 8.507059e+37 }
 0x128   :  { %821 = vrcp.f32 %v636_v62  ;;  %v606_v37 = vand.u32 2147483647, %v596_v59  ;;  %v608_v38 = vand.u32 2147483648, %v596_v59  ;;  %v648_v41 = vand.u32 2147483648, %v636_v62 }
 0x129   :  { %v1177_v32 = vadd.f32 1.0, %v675_v15  ;;  %v569_v5 = vor.u32 1.1754944e-38, %v568_v21  ;;  %v646_v45 = vand.u32 2147483647, %v636_v62  ;;  %v626_v48 = vmul.f32 %v625_v29, %v1119_v24 }
 0x12a   :  { %vm602_vm15 = vweird.f32 %v596_v59  ;;  %vm642_vm0 = vweird.f32 %v636_v62  ;;  %v609_v17 = vor.u32 1.1754944e-38, %v608_v38  ;;  %v649_v35 = vor.u32 1.1754944e-38, %v648_v41 }
 0x12b   :  { %v818_v8 = vpop.eup %817  ;;  %823 = vrcp.f32 %v1177_v32  ;;  %vm607_vm3 = vcmp.eq.f32.partialorder %v606_v37, 8.507059e+37  ;;  %vm647_vm4 = vcmp.eq.f32.partialorder %v646_v45, 8.507059e+37  ;;  %v664_v24 = vmul.f32 %v663_v19, %v1138_v52 }
 0x12c   :  { %v558_v14 = vmul.f32 %v818_v8, %v556_v55  ;;  %v820_v16 = vpop.eup %819  ;;  %vm563_vm10 = vweird.f32 %v818_v8  ;;  %v526_v58 = vmul.f32 0.5, %v1100_v49  ;;  %v686_v63 = vand.u32 2147483647, %v1177_v32 }
 0x12d   :  { %v598_v27 = vmul.f32 %v820_v16, %v596_v59  ;;  %vm603_vm12 = vweird.f32 %v820_v16  ;;  %vm564_vm13 = vmor %vm562_vm9, %vm563_vm10  ;;  %v688_v0 = vand.u32 2147483648, %v1177_v32  ;;  %v528_v52 = vmul.f32 0.5, %v1110_v9 }
 0x12e   :  { %v822_v20 = vpop.eup %821  ;;  %v559_v28 = vsub.f32 1.0, %v558_v14  ;;  %vm604_vm1 = vmor %vm602_vm15, %vm603_vm12  ;;  %vm682_vm6 = vweird.f32 %v1177_v32  ;;  %vm687_vm8 = vcmp.eq.f32.partialorder %v686_v63, 8.507059e+37  ;;  %vm766_vm9 = vcmask 130048  }
 0x12f   :  { %v638_v30 = vmul.f32 %v822_v20, %v636_v62  ;;  %v599_v36 = vsub.f32 1.0, %v598_v27  ;;  %vm643_vm14 = vweird.f32 %v822_v20  ;;  %v665_v62 = vadd.f32 1.1283791, %v664_v24 }
 0x130   :  { %v560_v50 = vmul.f32 %v818_v8, %v559_v28  ;;  %vm644_vm2 = vmor %vm642_vm0, %vm643_vm14  ;;  %v689_v12 = vor.u32 1.1754944e-38, %v688_v0 }
 0x131   :  { %v639_v4 = vsub.f32 1.0, %v638_v30  ;;  %v600_v43 = vmul.f32 %v820_v16, %v599_v36  ;;  %v824_v42 = vpop.eup %823  ;;  %v666_v14 = vmul.f32 %v665_v62, %v1122_v25 }
 0x132   :  { %v561_v39 = vadd.f32 %v818_v8, %v560_v50  ;;  %v678_v56 = vmul.f32 %v824_v42, %v1177_v32  ;;  %vm683_vm5 = vweird.f32 %v824_v42 }
 0x133   :  { %v640_v44 = vmul.f32 %v822_v20, %v639_v4  ;;  %v601_v23 = vadd.f32 %v820_v16, %v600_v43  ;;  %vm684_vm7 = vmor %vm682_vm6, %vm683_vm5 }
 0x134   :  { %v565_v46 = vsel %vm564_vm13, %v818_v8, %v561_v39  ;;  %v679_v60 = vsub.f32 1.0, %v678_v56 }
 0x135   :  { %v570_v3 = vsel %vm1179_vm11, %v569_v5, %v565_v46  ;;  %v641_v11 = vadd.f32 %v822_v20, %v640_v44  ;;  %v605_v40 = vsel %vm604_vm1, %v820_v16, %v601_v23  ;;  %v527_v16 = vmul.f32 0.5, %v1102_v22 }
 0x136   :  { %v571_v33 = vmul.f32 %v570_v3, %v546_v18  ;;  %v610_v51 = vsel %vm607_vm3, %v609_v17, %v605_v40  ;;  %v680_v6 = vmul.f32 %v824_v42, %v679_v60 }
 0x137   :  { %v645_v47 = vsel %vm644_vm2, %v822_v20, %v641_v11  ;;  %v611_v55 = vmul.f32 %v610_v51, %v586_v31  ;;  %v529_v20 = vmul.f32 0.5, %v1112_v10 }
 0x138   :  { %v779_v53 = vclamps-f32 %v571_v33, 1.0  ;;  %v650_v54 = vsel %vm647_vm4, %v649_v35, %v645_v47  ;;  %v681_v8 = vadd.f32 %v824_v42, %v680_v6 }
 0x139   :  { %v651_v57 = vmul.f32 %v650_v54, %v626_v48  ;;  %v780_v2 = vclamps-f32 %v611_v55, 1.0 }
 0x13a   :  { %v694_v59 = vadd.f32 1.0, %v779_v53  ;;  %v685_v26 = vsel %vm684_vm7, %v824_v42, %v681_v8 }
 0x13b   :  { %v781_v61 = vclamps-f32 %v651_v57, 1.0  ;;  %v695_v13 = vadd.f32 1.0, %v780_v2  ;;  %v690_v15 = vsel %vm687_vm8, %v689_v12, %v685_v26 }
 0x13c   :  { %v698_v1 = vmul.f32 %v694_v59, %v526_v58  ;;  %v691_v18 = vmul.f32 %v690_v15, %v666_v14 }
 0x13d   :  { %v696_v7 = vadd.f32 1.0, %v781_v61  ;;  %v699_v19 = vmul.f32 %v695_v13, %v527_v16 }
 0x13e   :  { %702 = vxpose.xlu0.b32.start [1/2] (short) (narrow) %v698_v1, 32  ;;  %v782_v9 = vclamps-f32 %v691_v18, 1.0 }
 0x13f   :  { %v700_v49 = vmul.f32 %v696_v7, %v528_v52 }
 0x140   :  { %v697_v28 = vadd.f32 1.0, %v782_v9 }
 0x141   :  { %734 = vxpose.xlu1.b32.start [1/2] (short) (narrow) %v700_v49, 32 }
 0x142   :  { %v701_v21 = vmul.f32 %v697_v28, %v529_v20 }
 0x146   :  { %703 = vxpose.xlu0.b32.end [2/2] (short) (narrow) %v699_v19, 32 }
 0x149   :  { %735 = vxpose.xlu1.b32.end [2/2] (short) (narrow) %v701_v21, 32 }
 0x1e2   :  { %v718_v27 = vpop.trf.xlu0 }
 0x1e3   :  { %767 = vst.msk [vmem:[%s1234_s4] sm:$0xff] %vm766_vm9, %v718_v27 }
 0x1e5   :  { %v750_v25 = vpop.trf.xlu1 }
 0x1e6   :  { %771 = vst.msk [vmem:[%s1234_s4 + $0x20] sm:$0xff] %vm766_vm9, %v750_v25 }
 0x1ea   :  { %v719_v22 = vpop.trf.xlu0 }
 0x1eb   :  { %768 = vst.msk [vmem:[%s1234_s4 + $0x8] sm:$0xff] %vm766_vm9, %v719_v22 }
 0x1ed   :  { %v751_v10 = vpop.trf.xlu1 }
 0x1ee   :  { %772 = vst.msk [vmem:[%s1234_s4 + $0x28] sm:$0xff] %vm766_vm9, %v751_v10 }
 0x1f2   :  { %v720_v29 = vpop.trf.xlu0 }
 0x1f3   :  { %769 = vst.msk [vmem:[%s1234_s4 + $0x10] sm:$0xff] %vm766_vm9, %v720_v29 }
 0x1f5   :  { %v752_v30 = vpop.trf.xlu1 }
 0x1f6   :  { %773 = vst.msk [vmem:[%s1234_s4 + $0x30] sm:$0xff] %vm766_vm9, %v752_v30 }
 0x1fa   :  { %v721_v31 = vpop.trf.xlu0 }
 0x1fb   :  { %770 = vst.msk [vmem:[%s1234_s4 + $0x18] sm:$0xff] %vm766_vm9, %v721_v31 }
 0x1fd   :  { %v753_v32 = vpop.trf.xlu1 }
 0x1fe   :  { %774 = vst.msk [vmem:[%s1234_s4 + $0x38] sm:$0xff] %vm766_vm9, %v753_v32 }

</bundles_post_ra>
